<compile_context>
chip_gen: v6e
topology: v6e:2x2x1
jax: 0.10.0
libtpu: 0.0.40
codegen_flags: <defaults>
</compile_context>

<pallas_src>
import jax
import jax.numpy as jnp
from jax.experimental import pallas as pl
from jax.experimental.pallas import tpu as pltpu


def _round_up(v, m):
    return ((v + m - 1) // m) * m


def _head_kernel(x_ref, w1_ref, b1_ref, w2_ref, b2_ref, o_ref):
    # x arrives in f32; downcast to bf16 in VMEM right before the MXU.
    x = x_ref[...].astype(jnp.bfloat16)
    # dense: bf16 x bf16 -> f32 accumulate on the MXU
    h = jnp.dot(x, w1_ref[...], preferred_element_type=jnp.float32)
    # bias add + tanh in f32 (VPU + EUP; free slots under an MXU/DMA-bound loop)
    h = jnp.tanh(h + b1_ref[...])
    # out_proj: downcast tanh output to bf16 for the MXU, accumulate in f32
    o = jnp.dot(h.astype(jnp.bfloat16), w2_ref[...],
                preferred_element_type=jnp.float32)
    o_ref[...] = (o + b2_ref[...]).astype(o_ref.dtype)


def bart_classification_head(x, w1, b1, w2, b2, *, tm=None):
    """x: [B, input_dim]; w1: [input_dim, inner_dim]; b1: [inner_dim];
       w2: [inner_dim, num_classes]; b2: [num_classes].
       For best performance pre-cast w1/w2 to bf16 once at model load."""
    B, d_in = x.shape
    inner = w1.shape[1]
    c = w2.shape[1]

    # Lane-dense class dim: pad to a multiple of 128 (unmasked vst, sane MXU N).
    c_pad = max(128, _round_up(c, 128))

    # Row tile: multiple of 16 (bf16 sublane packing). Small B -> single grid
    # step; medium B -> >=2 steps so both v7x TensorCores get work; large B ->
    # 512-row tiles to keep the MXU M dimension full and amortize per-step cost.
    if tm is None:
        if B <= 256:
            tm = _round_up(max(B, 16), 16)
        elif B <= 1024:
            tm = _round_up(pl.cdiv(B, 2), 16)
        else:
            tm = 512
    tm = max(16, _round_up(tm, 16))

    n_tiles = pl.cdiv(B, tm)
    b_pad = n_tiles * tm

    # x stays f32 (cast to bf16 inside the kernel); weights bf16 for the MXU
    # (no-op if already pre-cast at model load); biases stay f32 for the
    # epilogue.
    x_p = jnp.pad(x, ((0, b_pad - B), (0, 0))).astype(jnp.float32)
    w1_b = w1 if w1.dtype == jnp.bfloat16 else w1.astype(jnp.bfloat16)
    w2_b = w2 if w2.dtype == jnp.bfloat16 else w2.astype(jnp.bfloat16)
    w2_p = jnp.pad(w2_b, ((0, 0), (0, c_pad - c)))
    b1_2d = b1.reshape(1, inner).astype(jnp.float32)
    b2_2d = jnp.pad(b2.astype(jnp.float32), (0, c_pad - c)).reshape(1, c_pad)

    # Explicit VMEM budget:
    #   * double-buffered f32 x / f32 out tiles (pipelined specs)
    #   * single-buffered resident bf16 weights + f32 biases (Buffered(1))
    #   * in-kernel intermediates: bf16 copy of x tile, f32 h tile + bf16 copy
    # with 1.5x slack + 4 MiB headroom, clamped to 48 MiB (v7x physical VMEM
    # is 64 MiB per TensorCore).
    vmem_bytes = (
        2 * tm * d_in * 4          # x tiles (f32, double-buffered)
        + 2 * tm * c_pad * 4       # out tiles (f32, double-buffered)
        + d_in * inner * 2         # W1 bf16 (single buffer)
        + inner * c_pad * 2        # W2 bf16 (single buffer)
        + inner * 4 + c_pad * 4    # biases (f32)
        + tm * d_in * 2            # bf16 copy of x tile
        + tm * inner * (4 + 2)     # f32 h + bf16 downcast of h
    )
    vmem_limit = min(int(vmem_bytes * 1.5) + (4 << 20), 48 << 20)

    cost = pl.CostEstimate(
        flops=2 * b_pad * (d_in * inner + inner * c_pad),
        transcendentals=b_pad * inner,
        bytes_accessed=(x_p.size * 4 + w1_b.size * 2 + w2_p.size * 2
                        + b1_2d.size * 4 + b2_2d.size * 4 + b_pad * c_pad * 4),
    )

    resident = pl.Buffered(1)  # constant-index inputs: no second buffer
    out = pl.pallas_call(
        _head_kernel,
        out_shape=jax.ShapeDtypeStruct((b_pad, c_pad), jnp.float32),
        grid_spec=pltpu.PrefetchScalarGridSpec(
            num_scalar_prefetch=0,
            grid=(n_tiles,),
            in_specs=[
                pl.BlockSpec((tm, d_in), lambda i: (i, 0)),            # x tile (pipelined)
                pl.BlockSpec((d_in, inner), lambda i: (0, 0),
                             pipeline_mode=resident),                  # W1 resident
                pl.BlockSpec((1, inner), lambda i: (0, 0),
                             pipeline_mode=resident),                  # b1 resident
                pl.BlockSpec((inner, c_pad), lambda i: (0, 0),
                             pipeline_mode=resident),                  # W2 resident
                pl.BlockSpec((1, c_pad), lambda i: (0, 0),
                             pipeline_mode=resident),                  # b2 resident
            ],
            out_specs=pl.BlockSpec((tm, c_pad), lambda i: (i, 0)),
        ),
        compiler_params=pltpu.CompilerParams(
            dimension_semantics=("parallel",),
            vmem_limit_bytes=vmem_limit,
        ),
        cost_estimate=cost,
    )(x_p, w1_b, b1_2d, w2_p, b2_2d)

    # Strip the padded rows / padded (zero-weight) classes. Note: nothing
    # downstream may consume the unsliced (b_pad, c_pad) buffer.
    return out[:B, :c].astype(x.dtype)


def _reference(x, w1, b1, w2, b2):
    h = jnp.tanh(x @ w1 + b1)
    return h @ w2 + b2


if __name__ == "__main__":
    # Small shapes consistent with the module (sentence vectors -> logits).
    # num_classes=5 deliberately exercises the lane-padding path.
    input_dim = 128
    inner_dim = 128
    num_classes = 5

    key = jax.random.PRNGKey(0)
    kx, kw1, kb1, kw2, kb2, kx2 = jax.random.split(key, 6)

    # Deterministic parameter init (nn.Linear-like scaling). Weights pre-cast
    # to bf16 once here ("at model load") so the wrapper cast is a no-op.
    w1 = (jax.random.normal(kw1, (input_dim, inner_dim), jnp.float32)
          / jnp.sqrt(input_dim))
    b1 = jax.random.normal(kb1, (inner_dim,), jnp.float32) * 0.01
    w2 = (jax.random.normal(kw2, (inner_dim, num_classes), jnp.float32)
          / jnp.sqrt(inner_dim))
    b2 = jax.random.normal(kb2, (num_classes,), jnp.float32) * 0.01
    w1_bf16 = w1.astype(jnp.bfloat16)
    w2_bf16 = w2.astype(jnp.bfloat16)

    # Case 1: small B -> single grid step (tm = round_up(B, 16) = 32).
    B1 = 32
    x1 = jax.random.normal(kx, (B1, input_dim), dtype=jnp.float32)
    out1 = jax.block_until_ready(
        bart_classification_head(x1, w1_bf16, b1, w2_bf16, b2))
    ref1 = _reference(x1, w1, b1, w2, b2)
    assert out1.shape == (B1, num_classes)
    # bf16 MXU inputs with f32 accumulation -> bf16-level tolerance vs f32 ref.
    assert jnp.allclose(out1, ref1, atol=5e-2, rtol=5e-2), "mismatch (case 1)"

    # Case 2: B not a multiple of the tile -> 2 grid steps + padded rows,
    # exercising the pipelined/parallel batch axis and the row-pad path.
    B2 = 272
    x2 = jax.random.normal(kx2, (B2, input_dim), dtype=jnp.float32)
    out2 = jax.block_until_ready(
        bart_classification_head(x2, w1_bf16, b1, w2_bf16, b2))
    ref2 = _reference(x2, w1, b1, w2, b2)
    assert out2.shape == (B2, num_classes)
    assert jnp.allclose(out2, ref2, atol=5e-2, rtol=5e-2), "mismatch (case 2)"

    print("KERNEL_OK")
</pallas_src>

<mosaic_0001>
module attributes {stable_mosaic.version = 11 : i64} {
  func.func @_head_kernel(%arg0: i32, %arg1: memref<32x128xf32, #tpu.memory_space<vmem>>, %arg2: memref<128x128xbf16, #tpu.memory_space<vmem>>, %arg3: memref<1x128xf32, #tpu.memory_space<vmem>>, %arg4: memref<128x128xbf16, #tpu.memory_space<vmem>>, %arg5: memref<1x128xf32, #tpu.memory_space<vmem>>, %arg6: memref<32x128xf32, #tpu.memory_space<vmem>>) attributes {dimension_semantics = [#tpu.dimension_semantics<parallel>], iteration_bounds = array<i64: 1>, scalar_prefetch = 0 : i64, scratch_operands = 0 : i64, tpu.core_type = #tpu.core_type<tc>, window_params = [{transform_indices = @transform_0, window_bounds = array<i64: 32, 128>}, {pipeline_mode = #tpu.pipeline_mode<synchronous>, transform_indices = @transform_1, window_bounds = array<i64: 128, 128>}, {pipeline_mode = #tpu.pipeline_mode<synchronous>, transform_indices = @transform_2, window_bounds = array<i64: 1, 128>}, {pipeline_mode = #tpu.pipeline_mode<synchronous>, transform_indices = @transform_3, window_bounds = array<i64: 128, 128>}, {pipeline_mode = #tpu.pipeline_mode<synchronous>, transform_indices = @transform_4, window_bounds = array<i64: 1, 128>}, {transform_indices = @transform_5, window_bounds = array<i64: 32, 128>}]} {
    %c0 = arith.constant 0 : index
    %c0_0 = arith.constant 0 : index
    %0 = vector.load %arg1[%c0, %c0_0] : memref<32x128xf32, #tpu.memory_space<vmem>>, vector<32x128xf32>
    %1 = arith.truncf %0 : vector<32x128xf32> to vector<32x128xbf16>
    %c0_1 = arith.constant 0 : index
    %c0_2 = arith.constant 0 : index
    %2 = vector.load %arg2[%c0_1, %c0_2] : memref<128x128xbf16, #tpu.memory_space<vmem>>, vector<128x128xbf16>
    %cst = arith.constant dense<0.000000e+00> : vector<32x128xf32>
    %3 = tpu.matmul %1, %2, %cst {dimension_numbers = #tpu.dot_dimension_numbers<[1], [0], [0], [1], [0, 0, 1, 1], [], []>} : vector<32x128xbf16>, vector<128x128xbf16>, vector<32x128xf32> -> vector<32x128xf32>
    %c0_3 = arith.constant 0 : index
    %c0_4 = arith.constant 0 : index
    %4 = vector.load %arg3[%c0_3, %c0_4] : memref<1x128xf32, #tpu.memory_space<vmem>>, vector<1x128xf32>
    %5 = vector.broadcast %4 : vector<1x128xf32> to vector<32x128xf32>
    %6 = arith.addf %3, %5 : vector<32x128xf32>
    %7 = math.tanh %6 : vector<32x128xf32>
    %8 = arith.truncf %7 : vector<32x128xf32> to vector<32x128xbf16>
    %c0_5 = arith.constant 0 : index
    %c0_6 = arith.constant 0 : index
    %9 = vector.load %arg4[%c0_5, %c0_6] : memref<128x128xbf16, #tpu.memory_space<vmem>>, vector<128x128xbf16>
    %cst_7 = arith.constant dense<0.000000e+00> : vector<32x128xf32>
    %10 = tpu.matmul %8, %9, %cst_7 {dimension_numbers = #tpu.dot_dimension_numbers<[1], [0], [0], [1], [0, 0, 1, 1], [], []>} : vector<32x128xbf16>, vector<128x128xbf16>, vector<32x128xf32> -> vector<32x128xf32>
    %c0_8 = arith.constant 0 : index
    %c0_9 = arith.constant 0 : index
    %11 = vector.load %arg5[%c0_8, %c0_9] : memref<1x128xf32, #tpu.memory_space<vmem>>, vector<1x128xf32>
    %12 = vector.broadcast %11 : vector<1x128xf32> to vector<32x128xf32>
    %13 = arith.addf %10, %12 : vector<32x128xf32>
    %c0_10 = arith.constant 0 : index
    %c0_11 = arith.constant 0 : index
    %14 = vector.load %arg6[%c0_10, %c0_11] : memref<32x128xf32, #tpu.memory_space<vmem>>, vector<32x128xf32>
    tpu.vector_store %arg6[%c0_10, %c0_11], %13 {strides = array<i32>} : memref<32x128xf32, #tpu.memory_space<vmem>>, vector<32x128xf32>,
    return
  }
  func.func @transform_0(%arg0: i32) -> (i32, i32) {
    %c0_i32 = arith.constant 0 : i32
    %c0_i32_0 = arith.constant 0 : i32
    return %arg0, %c0_i32 : i32, i32
  }
  func.func @transform_1(%arg0: i32) -> (i32, i32) {
    %c0_i32 = arith.constant 0 : i32
    %c0_i32_0 = arith.constant 0 : i32
    %c0_i32_1 = arith.constant 0 : i32
    return %c0_i32, %c0_i32_0 : i32, i32
  }
  func.func @transform_2(%arg0: i32) -> (i32, i32) {
    %c0_i32 = arith.constant 0 : i32
    %c0_i32_0 = arith.constant 0 : i32
    %c0_i32_1 = arith.constant 0 : i32
    return %c0_i32, %c0_i32_0 : i32, i32
  }
  func.func @transform_3(%arg0: i32) -> (i32, i32) {
    %c0_i32 = arith.constant 0 : i32
    %c0_i32_0 = arith.constant 0 : i32
    %c0_i32_1 = arith.constant 0 : i32
    return %c0_i32, %c0_i32_0 : i32, i32
  }
  func.func @transform_4(%arg0: i32) -> (i32, i32) {
    %c0_i32 = arith.constant 0 : i32
    %c0_i32_0 = arith.constant 0 : i32
    %c0_i32_1 = arith.constant 0 : i32
    return %c0_i32, %c0_i32_0 : i32, i32
  }
  func.func @transform_5(%arg0: i32) -> (i32, i32) {
    %c0_i32 = arith.constant 0 : i32
    %c0_i32_0 = arith.constant 0 : i32
    return %arg0, %c0_i32 : i32, i32
  }
}

</mosaic_0001>

<bundles_post_ra>
// kernel: tpu_custom_call.1
= control target key start
LH: loop header
LB: loop body
LE: loop exit
PB: predicated region body
PF: predicated region fallthrough
CT: control target
= control target key end

     0   :  { %10 = vsyncpa [#allocation3], 0  ;;  %s595_s0 = inlined_call_operand.hbm [shape: f32[32,128], index: 0, kind: input, shape index: {}]   ;;  %s596_s1 = inlined_call_operand.hbm [shape: bf16[128,128], index: 1, kind: input, shape index: {}]   ;;  %s597_s2 = inlined_call_operand.vmem [shape: f32[1,128], index: 2, kind: input, shape index: {}]   ;;  %s598_s3 = inlined_call_operand.hbm [shape: bf16[128,128], index: 3, kind: input, shape index: {}]   ;;  %s599_s4 = inlined_call_operand.vmem [shape: f32[1,128], index: 4, kind: input, shape index: {}]   ;;  %s600_s5 = inlined_call_operand.hbm [shape: f32[32,128], index: 5, kind: output, shape index: {}]  }
   0x1   :  { %11 = vsyncpa [#allocation6], 0 }
   0x2   :  { %12 = vsyncpa [#allocation4], 0  ;;  %s533_s18 = smov [#allocation5]  }
   0x3   :  { %s30_s19 = sshll.u32 %s533_s18, 4  ;;  %s31_s19 = int_to_ptr.vmem [resolvable:$true] %s30_s19 }
   0x4   :  { %s455_s20 = scalar_lea.vmem %s31_s19, 1024  ;;  %p460_p1 = scmp.lt.s32.totalorder %s31_s19, %s31_s19 }
   0x5   :  { %p456_p0 = scmp.ne.s32.totalorder %s31_s19, %s455_s20  ;;  %p461_p2 = scmp.lt.s32.totalorder %s455_s20, %s455_s20 }
   0x7   :  { %p462_p3 = por %p461_p2, %p460_p1 }
   0x9   :  { %p463_p4 = pnand %p462_p3, %p456_p0 }
   0xb   :  { %466 = shalt.err (!%p463_p4)
}
   0xc   :  { %s534_s21 = smov 64   ;;  %s535_s22 = smov 4  }
   0xd   :  { %36 = dma.hbm_to_vmem [thread:$0]  %s596_s1, 1024, %s31_s19, [#allocation6], %s534_s21, %s534_s21, %s535_s22  }
   0xe   :  { %s536_s25 = smov [#allocation2]  }
   0xf   :  { %s18_s26 = sshll.u32 %s536_s25, 4  ;;  %s19_s26 = int_to_ptr.vmem [resolvable:$true] %s18_s26 }
  0x10   :  { %s475_s27 = scalar_lea.vmem %s19_s26, 512  ;;  %p480_p6 = scmp.lt.s32.totalorder %s19_s26, %s19_s26 }
  0x11   :  { %p476_p5 = scmp.ne.s32.totalorder %s19_s26, %s475_s27  ;;  %p481_p7 = scmp.lt.s32.totalorder %s475_s27, %s475_s27 }
  0x13   :  { %p482_p8 = por %p481_p7, %p480_p6 }
  0x15   :  { %p483_p9 = pnand %p482_p8, %p476_p5 }
  0x17   :  { %486 = shalt.err (!%p483_p9)
}
  0x18   :  { %s537_s28 = smov 128   ;;  %s538_s29 = smov 8  }
  0x19   :  { %24 = dma.hbm_to_vmem [thread:$0]  %s595_s0, 512, %s19_s26, [#allocation3], %s537_s28, %s537_s28, %s538_s29  }
  0x1a   :  { %s539_s1 = smov [#allocation7]  }
  0x1b   :  { %s44_s7 = sshll.u32 %s539_s1, 4  ;;  %s45_s7 = int_to_ptr.vmem [resolvable:$true] %s44_s7 }
  0x1c   :  { %s495_s8 = scalar_lea.vmem %s45_s7, 1024  ;;  %p500_p11 = scmp.lt.s32.totalorder %s45_s7, %s45_s7 }
  0x1d   :  { %p496_p10 = scmp.ne.s32.totalorder %s45_s7, %s495_s8  ;;  %p501_p12 = scmp.lt.s32.totalorder %s495_s8, %s495_s8 }
  0x1f   :  { %p502_p13 = por %p501_p12, %p500_p11 }
  0x21   :  { %p503_p0 = pnand %p502_p13, %p496_p10 }
  0x23   :  { %506 = shalt.err (!%p503_p0)
}
  0x24   :  { %50 = dma.hbm_to_vmem [thread:$0]  %s598_s3, 1024, %s45_s7, [#allocation6], %s534_s21, %s534_s21, %s535_s22  }
  0x25   :  { %527 = dma.done.wait [#allocation3], 512  }
  0x26   :  { %528 = vsyncadd [#allocation3], 4294966784 }
  0x27   :  { %529 = dma.done.wait [#allocation6], 2048  }
  0x28   :  { %530 = vsyncadd [#allocation6], 4294965248  ;;  %v423_v0 = vld [vmem:[#allocation5 + $0x38] sm:$0xff]   ;;  %v424_v1 = vld [vmem:[#allocation5 + $0x30] sm:$0xff]   ;;  %s540_s12 = smov [#allocation8]  }
  0x29   :  { %375 = vmatprep.subr.bf16.mxu0 %v423_v0  ;;  %v425_v2 = vld [vmem:[#allocation5 + $0x28] sm:$0xff]   ;;  %v426_v3 = vld [vmem:[#allocation5 + $0x20] sm:$0xff]   ;;  %v427_v7 = vld [vmem:[#allocation5 + $0x18] sm:$0xff]   ;;  %s324_s13 = sshll.u32 %s540_s12, 4  ;;  %s325_s13 = int_to_ptr.vmem [resolvable:$true] %s324_s13 }
  0x2a   :  { %376 = vmatpush3.bf16.msra.mxu0 %v423_v0  ;;  %v63_v4 = vld [vmem:[#allocation2] sm:$0xff]  ;;  %v64_v5 = vld [vmem:[#allocation2 + $0x8] sm:$0xff]  ;;  %v431_v8 = vld [vmem:[#allocation7 + $0x38] sm:$0xff]   ;;  %s507_s14 = scalar_lea.vmem %s325_s13, 512  ;;  %p512_p2 = scmp.lt.s32.totalorder %s325_s13, %s325_s13 }
  0x2b   :  { %377 = vmatprep.subr.bf16.mxu0 %v424_v1  ;;  %v67_v6 = vpack.c.bf16 %v64_v5, %v63_v4  ;;  %v432_v9 = vld [vmem:[#allocation7 + $0x30] sm:$0xff]   ;;  %395 = vmatprep.subr.bf16.mxu1 %v431_v8  ;;  %v429_v11 = vld [vmem:[#allocation5 + $0x8] sm:$0xff]   ;;  %v430_v12 = vld [vmem:[#allocation5] sm:$0xff]   ;;  %p508_p1 = scmp.ne.s32.totalorder %s325_s13, %s507_s14  ;;  %p513_p3 = scmp.lt.s32.totalorder %s507_s14, %s507_s14 }
  0x2c   :  { %396 = vmatpush3.bf16.msra.mxu1 %v431_v8  ;;  %v428_v10 = vld [vmem:[#allocation5 + $0x10] sm:$0xff]   ;;  %v66_v14 = vld [vmem:[#allocation2 + $0x18] sm:$0xff]  ;;  %v433_v16 = vld [vmem:[#allocation7 + $0x28] sm:$0xff]  }
  0x2d   :  { %391 = vmatprep.mubr.bf16.mxu0 %v67_v6  ;;  %397 = vmatprep.subr.bf16.mxu1 %v432_v9  ;;  %v65_v13 = vld [vmem:[#allocation2 + $0x10] sm:$0xff]  ;;  %v434_v17 = vld [vmem:[#allocation7 + $0x20] sm:$0xff]   ;;  %v435_v18 = vld [vmem:[#allocation7 + $0x18] sm:$0xff]   ;;  %p514_p4 = por %p513_p3, %p512_p2 }
  0x2e   :  { %378 = vmatpush3.bf16.msra.mxu0 %v424_v1  ;;  %v68_v15 = vpack.c.bf16 %v66_v14, %v65_v13  ;;  %v436_v19 = vld [vmem:[#allocation7 + $0x10] sm:$0xff]   ;;  %v437_v20 = vld [vmem:[#allocation7 + $0x8] sm:$0xff]   ;;  %v438_v21 = vld [vmem:[#allocation7] sm:$0xff]  }
  0x2f   :  { %379 = vmatprep.subr.bf16.mxu0 %v425_v2  ;;  %v337_v23 = vld [vmem:[%s597_s2] ss:$0 sm:$0xff]  ;;  %p515_p5 = pnand %p514_p4, %p508_p1 }
  0x30   :  { %398 = vmatpush3.bf16.msra.mxu1 %v432_v9  ;;  %v346_v37 = vld [vmem:[%s599_s4] ss:$0 sm:$0xff] }
  0x31   :  { %399 = vmatprep.subr.bf16.mxu1 %v433_v16 }
  0x32   :  { %380 = vmatpush3.bf16.msra.mxu0 %v425_v2 }
  0x33   :  { %381 = vmatprep.subr.bf16.mxu0 %v426_v3 }
  0x34   :  { %400 = vmatpush3.bf16.msra.mxu1 %v433_v16 }
  0x35   :  { %401 = vmatprep.subr.bf16.mxu1 %v434_v17 }
  0x36   :  { %382 = vmatpush3.bf16.msra.mxu0 %v426_v3 }
  0x37   :  { %383 = vmatprep.subr.bf16.mxu0 %v427_v7 }
  0x38   :  { %402 = vmatpush3.bf16.msra.mxu1 %v434_v17 }
  0x39   :  { %403 = vmatprep.subr.bf16.mxu1 %v435_v18 }
  0x3a   :  { %384 = vmatpush3.bf16.msra.mxu0 %v427_v7 }
  0x3b   :  { %385 = vmatprep.subr.bf16.mxu0 %v428_v10 }
  0x3c   :  { %404 = vmatpush3.bf16.msra.mxu1 %v435_v18 }
  0x3d   :  { %405 = vmatprep.subr.bf16.mxu1 %v436_v19 }
  0x3e   :  { %386 = vmatpush3.bf16.msra.mxu0 %v428_v10 }
  0x3f   :  { %387 = vmatprep.subr.bf16.mxu0 %v429_v11 }
  0x40   :  { %406 = vmatpush3.bf16.msra.mxu1 %v436_v19 }
  0x41   :  { %407 = vmatprep.subr.bf16.mxu1 %v437_v20 }
  0x42   :  { %388 = vmatpush3.bf16.msra.mxu0 %v429_v11 }
  0x43   :  { %389 = vmatprep.subr.bf16.mxu0 %v430_v12 }
  0x44   :  { %408 = vmatpush3.bf16.msra.mxu1 %v437_v20 }
  0x45   :  { %409 = vmatprep.subr.bf16.mxu1 %v438_v21 }
  0x46   :  { %390 = vmatpush3.bf16.msra.mxu0 %v430_v12 }
  0x48   :  { %410 = vmatpush3.bf16.msra.mxu1 %v438_v21 }
  0x49   :  { %392 = vmatmul.mubr.bf16.vlgmr.msra.gmra.mxu0 %v68_v15 }
 0x109   :  { %v393_v22 = vpop.f32.mrf.mxu0 }
 0x10a   :  { %v183_v28 = vadd.f32 %v393_v22, %v337_v23 }
 0x10b   :  { %v174_v24 = vpop.f32.mrf.mxu0 }
 0x10c   :  { %v175_v25 = vadd.f32 %v337_v23, %v174_v24 }
 0x10d   :  { %v394_v26 = vpop.f32.mrf.mxu0 }
 0x10e   :  { %v186_v27 = vadd.f32 %v394_v26, %v337_v23  ;;  %439 = vtanh.f32 %v175_v25 }
 0x10f   :  { %v177_v29 = vpop.f32.mrf.mxu0 }
 0x110   :  { %v178_v30 = vadd.f32 %v337_v23, %v177_v29  ;;  %441 = vtanh.f32 %v186_v27 }
 0x112   :  { %443 = vtanh.f32 %v178_v30 }
 0x113   :  { %445 = vtanh.f32 %v183_v28 }
 0x11b   :  { %v440_v31 = vpop.eup %439 }
 0x11d   :  { %v442_v32 = vpop.eup %441 }
 0x11f   :  { %v444_v33 = vpop.eup %443 }
 0x120   :  { %v446_v34 = vpop.eup %445  ;;  %v193_v35 = vpack.c.bf16 %v444_v33, %v440_v31 }
 0x121   :  { %v194_v36 = vpack.c.bf16 %v442_v32, %v446_v34 }
 0x122   :  { %411 = vmatprep.mubr.bf16.mxu1 %v193_v35 }
 0x123   :  { %412 = vmatmul.mubr.bf16.vlgmr.msra.gmra.mxu1 %v194_v36 }
 0x1e3   :  { %v413_v38 = vpop.f32.mrf.mxu1 }
 0x1e4   :  { %v309_v39 = vadd.f32 %v413_v38, %v346_v37 }
 0x1e5   :  { %v300_v40 = vpop.f32.mrf.mxu1 }
 0x1e6   :  { %317 = vst [vmem:[#allocation8 + $0x10] sm:$0xff] %v309_v39  ;;  %v301_v41 = vadd.f32 %v346_v37, %v300_v40 }
 0x1e7   :  { %v414_v42 = vpop.f32.mrf.mxu1 }
 0x1e8   :  { %315 = vst [vmem:[#allocation8] sm:$0xff] %v301_v41  ;;  %v312_v43 = vadd.f32 %v414_v42, %v346_v37 }
 0x1e9   :  { %v303_v44 = vpop.f32.mrf.mxu1 }
 0x1ea   :  { %318 = vst [vmem:[#allocation8 + $0x18] sm:$0xff] %v312_v43  ;;  %v304_v45 = vadd.f32 %v346_v37, %v303_v44 }
 0x1ec   :  { %316 = vst [vmem:[#allocation8 + $0x8] sm:$0xff] %v304_v45 }
 0x1ed   :  { %518 = shalt.err (!%p515_p5)
}
 0x1ee   :  { %330 = dma.vmem_to_hbm [thread:$0]  %s325_s13, 512, %s600_s5, [#allocation4], %s537_s28, %s537_s28, %s538_s29  }
 0x1ef   :  { %531 = dma.done.wait [#allocation4], 512  }
 0x1f0   :  { %532 = vsyncadd [#allocation4], 4294966784 }
 0x1f1   :  { %334 = vsyncpa [#allocation3], 1 }
 0x1f2   :  { %335 = vsyncpa [#allocation6], 1 }
 0x1f3   :  { %336 = vsyncpa [#allocation4], 1 }

</bundles_post_ra>
